<compile_context>
chip_gen: v7x
topology: tpu7x:2x2x1
jax: 0.10.0
libtpu: 0.0.40
codegen_flags: <defaults>
</compile_context>

<pallas_src>
import jax
import jax.numpy as jnp
from jax.experimental import pallas as pl
from jax.experimental.pallas import tpu as pltpu

# Sobel kernels, kept for documentation / reference checking.
KERNEL_X = jnp.array([[-1.0, 0.0, 1.0],
                      [-2.0, 0.0, 2.0],
                      [-1.0, 0.0, 1.0]], dtype=jnp.float32)
KERNEL_Y = jnp.array([[-1.0, -2.0, -1.0],
                      [ 0.0,  0.0,  0.0],
                      [ 1.0,  2.0,  1.0]], dtype=jnp.float32)


def _round_up(v, m):
    return (v + m - 1) // m * m


def _sobel_kernel(x_ref, o_ref):
    # x_ref: (b, H, W), o_ref: (b, H-2, W-2).  Each batch slice is processed
    # independently (no cross-batch mixing), so a partial final batch block
    # (garbage rows past N) can never contaminate valid outputs.
    x = x_ref[...].astype(jnp.float32)

    # Separable Sobel (cross-correlation, matching F.conv2d):
    #   v[i,j] = x[i,j] + 2*x[i+1,j] + x[i+2,j]       (vertical [1,2,1])
    #   h[i,j] = x[i,j] + 2*x[i,j+1] + x[i,j+2]       (horizontal [1,2,1])
    #   gx[i,j] = v[i,j+2] - v[i,j]
    #   gy[i,j] = h[i+2,j] - h[i,j]
    v = x[:, :-2, :] + 2.0 * x[:, 1:-1, :] + x[:, 2:, :]      # (b, H-2, W)
    h = x[:, :, :-2] + 2.0 * x[:, :, 1:-1] + x[:, :, 2:]      # (b, H, W-2)

    gx = v[:, :, 2:] - v[:, :, :-2]                           # (b, H-2, W-2)
    gy = h[2:, :, :] if False else h[:, 2:, :] - h[:, :-2, :] # (b, H-2, W-2)

    o_ref[...] = (jnp.abs(gx) + jnp.abs(gy)).astype(o_ref.dtype)


def gradient_net(x, *, vmem_block_budget_bytes=1 << 20):
    """x: (N, 1, H, W) float32/bfloat16 -> (N, 1, H-2, W-2) same dtype."""
    N, C, H, W = x.shape
    assert C == 1, "GradientNet's fixed 3x3 kernels expect a single channel"
    assert H >= 3 and W >= 3, "spatial dims must be >= 3 for a valid 3x3 conv"

    if x.dtype not in (jnp.float32, jnp.bfloat16):
        x = x.astype(jnp.float32)
    out_dtype = x.dtype

    # Rank-only reshape (free): channel dim folded away.
    x3 = x.reshape(N, H, W)

    # Per-image VMEM footprint: the last two dims are laid out on vreg tiles,
    # i.e. padded to (8,128) for f32 / (16,128) for bf16.  Size the batch
    # block against this padded footprint so block + intermediates + I/O
    # double-buffers stay inside every generation's default scoped VMEM.
    itemsize = x.dtype.itemsize
    sublane = 8 * (4 // itemsize)
    per_image_vmem = _round_up(H, sublane) * _round_up(W, 128) * itemsize
    b_budget = max(1, vmem_block_budget_bytes // per_image_vmem)

    # Keep >= min(N, 8) grid steps: shards the "parallel" axis across v7x's
    # two TensorCores and leaves room for cross-step DMA double-buffering.
    target_blocks = min(N, 8)
    b_tile = int(max(1, min(N, b_budget, max(1, N // target_blocks))))
    n_blocks = pl.cdiv(N, b_tile)

    out3 = pl.pallas_call(
        _sobel_kernel,
        out_shape=jax.ShapeDtypeStruct((N, H - 2, W - 2), out_dtype),
        grid=(n_blocks,),
        # Last two block dims equal the full array dims, so no (8,128)
        # divisibility padding (and hence no wrapper pad/crop) is required.
        in_specs=[pl.BlockSpec((b_tile, H, W), lambda i: (i, 0, 0))],
        out_specs=pl.BlockSpec((b_tile, H - 2, W - 2), lambda i: (i, 0, 0)),
        compiler_params=pltpu.CompilerParams(
            dimension_semantics=("parallel",)),
    )(x3)

    # Rank-only reshape (free): restore the channel dim.
    return out3.reshape(N, 1, H - 2, W - 2)


def _reference(x):
    """Pure-JAX reference using explicit conv for verification."""
    xf = x.astype(jnp.float32)
    wx = KERNEL_X[None, None]  # (1,1,3,3)
    wy = KERNEL_Y[None, None]
    dn = jax.lax.conv_dimension_numbers(xf.shape, wx.shape, ("NCHW", "OIHW", "NCHW"))
    gx = jax.lax.conv_general_dilated(xf, wx, (1, 1), "VALID", dimension_numbers=dn)
    gy = jax.lax.conv_general_dilated(xf, wy, (1, 1), "VALID", dimension_numbers=dn)
    return jnp.abs(gx) + jnp.abs(gy)


if __name__ == "__main__":
    key = jax.random.PRNGKey(0)

    # Shapes consistent with the module: batch=2, channels=1, spatial=16.
    x = jax.random.normal(key, (2, 1, 16, 16), dtype=jnp.float32)
    out = jax.block_until_ready(gradient_net(x))
    ref = _reference(x)
    assert out.shape == (2, 1, 14, 14), out.shape
    assert jnp.allclose(out, ref, atol=1e-4, rtol=1e-4), "mismatch vs reference"

    # Unaligned-shape edge case (H not multiple of 8, W not multiple of 128):
    # exercises the "block dims equal full array dims" path with no padding.
    x2 = jax.random.normal(jax.random.PRNGKey(1), (3, 1, 17, 20), dtype=jnp.float32)
    out2 = jax.block_until_ready(gradient_net(x2))
    ref2 = _reference(x2)
    assert out2.shape == (3, 1, 15, 18), out2.shape
    assert jnp.allclose(out2, ref2, atol=1e-4, rtol=1e-4), "mismatch vs reference (unaligned)"

    print("KERNEL_OK")
</pallas_src>

<mosaic_0001>
module attributes {stable_mosaic.version = 11 : i64} {
  func.func @_sobel_kernel(%arg0: i32, %arg1: memref<1x16x16xf32, #tpu.memory_space<vmem>>, %arg2: memref<1x14x14xf32, #tpu.memory_space<vmem>>) attributes {dimension_semantics = [#tpu.dimension_semantics<parallel>], iteration_bounds = array<i64: 2>, scalar_prefetch = 0 : i64, scratch_operands = 0 : i64, tpu.core_type = #tpu.core_type<tc>, window_params = [{transform_indices = @transform_0, window_bounds = array<i64: 1, 16, 16>}, {transform_indices = @transform_1, window_bounds = array<i64: 1, 14, 14>}]} {
    %c0 = arith.constant 0 : index
    %c0_0 = arith.constant 0 : index
    %c0_1 = arith.constant 0 : index
    %0 = vector.load %arg1[%c0, %c0_0, %c0_1] : memref<1x16x16xf32, #tpu.memory_space<vmem>>, vector<1x16x16xf32>
    %1 = vector.extract_strided_slice %0 {offsets = [0, 0, 0], sizes = [1, 14, 16], strides = [1, 1, 1]} : vector<1x16x16xf32> to vector<1x14x16xf32>
    %2 = vector.extract_strided_slice %0 {offsets = [0, 1, 0], sizes = [1, 14, 16], strides = [1, 1, 1]} : vector<1x16x16xf32> to vector<1x14x16xf32>
    %cst = arith.constant 2.000000e+00 : f32
    %3 = vector.broadcast %cst : f32 to vector<1x14x16xf32>
    %4 = arith.mulf %3, %2 : vector<1x14x16xf32>
    %5 = arith.addf %1, %4 : vector<1x14x16xf32>
    %6 = vector.extract_strided_slice %0 {offsets = [0, 2, 0], sizes = [1, 14, 16], strides = [1, 1, 1]} : vector<1x16x16xf32> to vector<1x14x16xf32>
    %7 = arith.addf %5, %6 : vector<1x14x16xf32>
    %8 = vector.extract_strided_slice %0 {offsets = [0, 0, 0], sizes = [1, 16, 14], strides = [1, 1, 1]} : vector<1x16x16xf32> to vector<1x16x14xf32>
    %9 = vector.extract_strided_slice %0 {offsets = [0, 0, 1], sizes = [1, 16, 14], strides = [1, 1, 1]} : vector<1x16x16xf32> to vector<1x16x14xf32>
    %cst_2 = arith.constant 2.000000e+00 : f32
    %10 = vector.broadcast %cst_2 : f32 to vector<1x16x14xf32>
    %11 = arith.mulf %10, %9 : vector<1x16x14xf32>
    %12 = arith.addf %8, %11 : vector<1x16x14xf32>
    %13 = vector.extract_strided_slice %0 {offsets = [0, 0, 2], sizes = [1, 16, 14], strides = [1, 1, 1]} : vector<1x16x16xf32> to vector<1x16x14xf32>
    %14 = arith.addf %12, %13 : vector<1x16x14xf32>
    %15 = vector.extract_strided_slice %7 {offsets = [0, 0, 2], sizes = [1, 14, 14], strides = [1, 1, 1]} : vector<1x14x16xf32> to vector<1x14x14xf32>
    %16 = vector.extract_strided_slice %7 {offsets = [0, 0, 0], sizes = [1, 14, 14], strides = [1, 1, 1]} : vector<1x14x16xf32> to vector<1x14x14xf32>
    %17 = arith.subf %15, %16 : vector<1x14x14xf32>
    %18 = vector.extract_strided_slice %14 {offsets = [0, 2, 0], sizes = [1, 14, 14], strides = [1, 1, 1]} : vector<1x16x14xf32> to vector<1x14x14xf32>
    %19 = vector.extract_strided_slice %14 {offsets = [0, 0, 0], sizes = [1, 14, 14], strides = [1, 1, 1]} : vector<1x16x14xf32> to vector<1x14x14xf32>
    %20 = arith.subf %18, %19 : vector<1x14x14xf32>
    %21 = math.absf %17 : vector<1x14x14xf32>
    %22 = math.absf %20 : vector<1x14x14xf32>
    %23 = arith.addf %21, %22 : vector<1x14x14xf32>
    %c0_3 = arith.constant 0 : index
    %c0_4 = arith.constant 0 : index
    %c0_5 = arith.constant 0 : index
    %24 = vector.load %arg2[%c0_3, %c0_4, %c0_5] : memref<1x14x14xf32, #tpu.memory_space<vmem>>, vector<1x14x14xf32>
    tpu.vector_store %arg2[%c0_3, %c0_4, %c0_5], %23 {strides = array<i32>} : memref<1x14x14xf32, #tpu.memory_space<vmem>>, vector<1x14x14xf32>,
    return
  }
  func.func @transform_0(%arg0: i32) -> (i32, i32, i32) {
    %c0_i32 = arith.constant 0 : i32
    %c0_i32_0 = arith.constant 0 : i32
    %c0_i32_1 = arith.constant 0 : i32
    return %arg0, %c0_i32, %c0_i32_0 : i32, i32, i32
  }
  func.func @transform_1(%arg0: i32) -> (i32, i32, i32) {
    %c0_i32 = arith.constant 0 : i32
    %c0_i32_0 = arith.constant 0 : i32
    %c0_i32_1 = arith.constant 0 : i32
    return %arg0, %c0_i32, %c0_i32_0 : i32, i32, i32
  }
}

</mosaic_0001>

<bundles_post_ra>
// kernel: tpu_custom_call.1
= control target key start
LH: loop header
LB: loop body
LE: loop exit
PB: predicated region body
PF: predicated region fallthrough
CT: control target
= control target key end

     0   :  { %6 = vsyncpa [#allocation3], 0  ;;  %s547_s0 = inlined_call_operand.hbm [shape: f32[2,16,16], index: 0, kind: input, shape index: {}]   ;;  %s548_s1 = inlined_call_operand.vmem [shape: f32[2,14,14], index: 1, kind: output, shape index: {}]  }
   0x1   :  { %8 = vsyncpa [#allocation3 + $0x1], 0  ;;  %s433_s6 = smov 0   ;;  %s435_s7 = smov 0  }
   0x2   :  { %s437_s8 = smov 0   ;;  %s439_s9 = smov 0  }
   0x3 LB: > { %s452_s10 = sadd.s32 4294967295, %s415_s9   ;;  %s455_s11 = sadd.s32 1, %s415_s9   ;;  %s415_s9 = sphi %s439_s9, %s555_s9   ;;  %s411_s8 = sphi %s437_s8, %s554_s8   ;;  %s407_s7 = sphi %s435_s7, %s553_s7   ;;  %s403_s6 = sphi %s433_s6, %s552_s6  }
   0x4   : > { %s18_s12 = ssub.s32 %s415_s9, %s455_s11  ;;  %s21_s13 = sadd.s32 1, %s411_s8 }
   0x5   : > { %p19_p0 = scmp.eq.s32.totalorder %s18_s12, 0  ;;  %p28_p1 = scmp.ne.s32.totalorder %s411_s8, %s407_s7 }
   0x6   : > { %p29_p2 = scmp.eq.s32.totalorder %s415_s9, 0  ;;  %p34_p3 = scmp.ne.s32.totalorder %s407_s7, %s403_s6 }
   0x7   : > { %s465_s14 = scalar_select %p19_p0, %s411_s8, %s21_s13  }
   0x8   : > { %p30_p4 = por %p29_p2, %p28_p1  ;;  %p35_p5 = scmp.eq.s32.totalorder %s452_s10, 0 }
   0x9   : > { %p313_p6 = scmp.lt.s32.totalorder %s415_s9, 2  ;;  %s84_s16 = sand.u32 1, %s411_s8  }
   0xa   : > { %p469_p7 = por %p35_p5, %p34_p3  ;;  %s296_s17 = sshll.u32 %s84_s16, 4 }
   0xb   : > { %s305_s18 = sshll.u32 %s415_s9, 8  ;;  %s88_s22 = scalar_lea.vmem [#allocation2], %s296_s17 }
   0xc   : > { %s478_s21 = scalar_lea.hbm %s547_s0, %s305_s18  ;;  %s95_s23 = sshll.u32 %s88_s22, 4  ;;  %s480_s23 = int_to_ptr.vmem [resolvable:$true] %s95_s23 }
   0xd   : > { %p482_p8 = pnand %p313_p6, %p30_p4  ;;  %s487_s25 = scalar_lea.sflag [#allocation3], %s84_s16 }
   0xe   : > { %s351_s26 = scalar_lea.hbm %s478_s21, 256  ;;  %s356_s29 = scalar_lea.hbm %s547_s0, 512 }
   0xf   : > { %p352_p10 = scmp.ne.s32.totalorder %s478_s21, %s351_s26  ;;  %p353_p11 = pneg %p482_p8 }
  0x10   : > { %p357_p0 = scmp.lt.u32.totalorder %s478_s21, %s547_s0  ;;  %p358_p1 = scmp.lt.u32.totalorder %s356_s29, %s351_s26 }
  0x11   : > { %p354_p12 = pnand %p353_p11, %p352_p10  ;;  %p360_p3 = scmp.lt.u32.totalorder %s351_s26, %s478_s21 }
  0x12   : > { %p359_p2 = por %p358_p1, %p357_p0 }
  0x13   : > { %p355_p13 = pneg %p354_p12 }
  0x14   : > { %p361_p4 = por %p360_p3, %p359_p2 }
  0x16   : > { %p362_p5 = pnand %p361_p4, %p355_p13 }
  0x18   : > { %365 = shalt.err (!%p362_p5)
}
  0x19   : > { %s366_s3 = scalar_lea.vmem %s480_s23, 256  ;;  %s417_s4 = smov [#allocation2]  }
  0x1a   : > { %p367_p6 = scmp.ne.s32.totalorder %s480_s23, %s366_s3  ;;  %s371_s5 = sshll.u32 %s417_s4, 4  ;;  %s372_s5 = int_to_ptr.vmem [resolvable:$false] %s371_s5 }
  0x1b   : > { %s373_s6 = scalar_lea.vmem %s372_s5, 512  ;;  %p374_p9 = scmp.lt.s32.totalorder %s480_s23, %s372_s5 }
  0x1c   : > { %p369_p10 = pnand %p367_p6, %p353_p11  ;;  %p375_p0 = scmp.lt.s32.totalorder %s373_s6, %s366_s3 }
  0x1e   : > { %p370_p12 = pneg %p369_p10  ;;  %p376_p1 = por %p375_p0, %p374_p9 }
  0x20   : > { %p377_p2 = pnand %p376_p1, %p370_p12 }
  0x22   : > { %380 = shalt.err (!%p377_p2)
}
  0x23   : > { %s418_s12 = smov 128   ;;  %s419_s13 = smov 8  }
  0x24   : > { %312 = dma.hbm_to_vmem [thread:$0]  (!%p482_p8), %s478_s21, 256, %s480_s23, %s487_s25, %s418_s12, %s418_s12, %s419_s13  }
  0x25   : > { %p103_p11 = scmp.lt.s32.totalorder %s415_s9, 3  ;;  %p551_p13 = scmp.ge.s32.totalorder %s415_s9, 1 }
  0x27   : > { %p104_p3 = pnand %p551_p13, %p103_p11 }
  0x28   : > { %s109_s16 = sand.u32 (!%p104_p3), 1, %s407_s7  }
  0x29   : > { %107 = sbr.rel (%p104_p3) target bundleno = 418 (0x1a2), region = 24  ;;  %s300_s17 = sshll.u32 (!%p104_p3), %s109_s16, 4 }
  0x2a   : > { %s110_s18 = scalar_lea.sflag (!%p104_p3), [#allocation3], %s109_s16  ;;  %s113_s19 = scalar_lea.vmem (!%p104_p3), [#allocation2], %s300_s17 }
  0x30   : > { %398 = dma.done.wait (%p469_p7), %s110_s18, 256  }
  0x31   : > { %400 = vsyncadd (%p469_p7), %s110_s18, 4294967040  ;;  %v137_v0 = vld [vmem:[%s113_s19] sm:$0xff]  ;;  %v138_v1 = vld [vmem:[%s113_s19 + $0x8] sm:$0xff]  ;;  %s420_s20 = smov 126   ;;  %vm143_vm0 = vcmask 1046528   ;;  %vm153_vm1 = vcmask 1045504  }
  0x32   : > { %v139_v2 = vmul.f32 2.0, %v137_v0  ;;  %169 = vrot.lane.b32.xlu1 %v137_v0, %s420_s20  ;;  %v140_v3 = vmul.f32 2.0, %v138_v1  ;;  %v155_v4 = vrot.slane %v138_v1, 2  ;;  %v154_v5 = vrot.slane %v137_v0, 2  ;;  %s421_s9 = smov 127   ;;  %s422_s15 = smov 2  }
  0x33   : > { %vm189_vm2 = vcmask 1041408   ;;  %p132_p7 = scmp.lt.s32.totalorder %s452_s10, 1  ;;  %vm224_vm3 = vcmask 111616   ;;  %vm222_vm4 = vcmask 113664  }
  0x34   : > { %161 = vrot.lane.b32.xlu0 %v139_v2, %s421_s9  ;;  %v144_v6 = vrot.slane %v139_v2, 1  ;;  %v145_v7 = vrot.slane %v140_v3, 1  ;;  %v156_v10 = vsel %vm153_vm1, %v154_v5, %v155_v4 }
  0x35   : > { %s557_s10 = smov (!%p132_p7, %s452_s10), 1 }
  0x36   : > { %171 = vrot.lane.b32.xlu1 %v138_v1, %s420_s20  ;;  %v150_v8 = vadd.f32 %v145_v7, %v138_v1  ;;  %v146_v9 = vsel %vm143_vm0, %v144_v6, %v145_v7  ;;  %s306_s21 = sshll.u32 %s557_s10, 4 }
  0x37   : > { %v149_v11 = vadd.f32 %v146_v9, %v137_v0  ;;  %s136_s24 = scalar_lea.vmem %s548_s1, %s306_s21 }
  0x38   : > { %163 = vrot.lane.b32.xlu0 %v140_v3, %s421_s9  ;;  %v160_v12 = vadd.f32 %v155_v4, %v150_v8 }
  0x39   : > { %v159_v13 = vadd.f32 %v156_v10, %v149_v11 }
  0x3a   : > { %181 = vrot.lane.b32.xlu1 %v160_v12, %s422_s15 }
  0x3c   : > { %179 = vrot.lane.b32.xlu0 %v159_v13, %s422_s15 }
  0xa4   : > { %v170_v14 = vpop.permute.xlu1 %169 }
  0xa6   : > { %v162_v15 = vpop.permute.xlu0 %161 }
  0xa7   : > { %v167_v16 = vadd.f32 %v162_v15, %v137_v0 }
  0xa8   : > { %v172_v19 = vpop.permute.xlu1 %171 }
  0xa9   : > { %v175_v17 = vadd.f32 %v170_v14, %v167_v16 }
  0xaa   : > { %v164_v18 = vpop.permute.xlu0 %163 }
  0xab   : > { %v190_v20 = vrot.slane %v175_v17, 6  ;;  %v168_v21 = vadd.f32 %v164_v18, %v138_v1 }
  0xac   : > { %v182_v32 = vpop.permute.xlu1 %181 }
  0xad   : > { %v176_v22 = vadd.f32 %v172_v19, %v168_v21  ;;  %v195_v23 = vsub.f32 %v175_v17, %v190_v20  ;;  %v186_v34 = vsub.f32 %v160_v12, %v182_v32 }
  0xae   : > { %v180_v33 = vpop.permute.xlu0 %179 }
  0xaf   : > { %v191_v24 = vrot.slane %v176_v22, 6  ;;  %v199_v26 = vand.u32 2147483647, %v195_v23  ;;  %v185_v35 = vsub.f32 %v159_v13, %v180_v33  ;;  %v198_v36 = vand.u32 2147483647, %v186_v34 }
  0xb1   : > { %v192_v25 = vsel %vm189_vm2, %v190_v20, %v191_v24  ;;  %v203_v29 = vrot.slane %v199_v26, 2  ;;  %v197_v37 = vand.u32 2147483647, %v185_v35 }
  0xb2   : > { %v196_v27 = vsub.f32 %v176_v22, %v192_v25 }
  0xb4   : > { %v200_v28 = vand.u32 2147483647, %v196_v27 }
  0xb6   : > { %v204_v30 = vrot.slane %v200_v28, 2 }
  0xb8   : > { %208 = vrot.lane.b32.xlu1 %v204_v30, %s422_s15  ;;  %v205_v31 = vsel %vm153_vm1, %v203_v29, %v204_v30 }
  0xb9   : > { %206 = vrot.lane.b32.xlu0 %v205_v31, %s422_s15 }
 0x12a   : > { %v209_v38 = vpop.permute.xlu1 %208 }
 0x12b   : > { %v213_v39 = vadd.f32 %v209_v38, %v198_v36  ;;  %v207_v40 = vpop.permute.xlu0 %206 }
 0x12c   : > { %v212_v41 = vadd.f32 %v207_v40, %v197_v37 }
 0x12d   : > { %218 = vrot.lane.b32.xlu1 %v213_v39, %s420_s20 }
 0x12e   : > { %216 = vrot.lane.b32.xlu0 %v212_v41, %s420_s20 }
 0x19f   : > { %v219_v42 = vpop.permute.xlu1 %218 }
 0x1a0   : > { %225 = vst.msk [vmem:[%s136_s24 + $0x8] sm:$0x3f] %vm224_vm3, %v219_v42  ;;  %v217_v43 = vpop.permute.xlu0 %216 }
 0x1a1   : > { %223 = vst.msk [vmem:[%s136_s24] sm:$0xff] %vm222_vm4, %v217_v43 }
 0x1a2 PF: > { %p11_p8 = scmp.ge.s32.totalorder %s455_s11, 4   ;;  %s552_s6 = smov %s407_s7 }
 0x1a3   : > { %s553_s7 = smov %s411_s8  ;;  %s554_s8 = smov %s465_s14 }
 0x1a4   : > { %s555_s9 = smov %s455_s11  ;;  %13 = sbr.rel (!%p11_p8) target bundleno = 3 (0x3), region = 64 }
 0x1ab   :  { %247 = vsyncpa [#allocation3], 1 }
 0x1ac   :  { %249 = vsyncpa [#allocation3 + $0x1], 1 }

</bundles_post_ra>
